<compile_context>
chip_gen: v7x
topology: tpu7x:2x2x1
jax: 0.10.0
libtpu: 0.0.40
codegen_flags: <defaults>
</compile_context>

<pallas_src>
import functools
import math

import jax
import jax.numpy as jnp
from jax.experimental import pallas as pl
from jax.experimental.pallas import tpu as pltpu

# --- config (small, BERT-like) -------------------------------------------------
BATCH = 2
SEQ = 8
HIDDEN = 32
NUM_HEADS = 4
HEAD_DIM = HIDDEN // NUM_HEADS
LN_EPS = 1e-12
_NEG_INF = -1e30


def _bert_attn_kernel(x_ref, mask_ref, wqkv_ref, bqkv_ref, wo_ref, bo_ref,
                      gamma_ref, beta_ref, o_ref, *, heads, head_dim):
    """One grid step handles `rows = bb*SEQ` rows (bb = batches per block)."""
    rows, d = x_ref.shape                # rows = bb * seq, d = hidden

    x = x_ref[...]                       # (rows, d)
    bqkv = bqkv_ref[...]                 # (1, 3d)  -- load bias/affine params once
    bo = bo_ref[...]                     # (1, d)
    gamma = gamma_ref[...]               # (1, d)
    beta = beta_ref[...]                 # (1, d)

    # Fused Q/K/V projection: one MXU matmul.
    qkv = jnp.dot(x, wqkv_ref[...], preferred_element_type=jnp.float32) + bqkv
    scale = 1.0 / math.sqrt(head_dim)
    q = qkv[:, 0:d] * scale              # fold 1/sqrt(Dh) into q once
    k = qkv[:, d:2 * d]
    v = qkv[:, 2 * d:3 * d]

    def stack_heads(t):                  # (rows, d) -> (heads*rows, head_dim)
        return jnp.concatenate(
            [t[:, h * head_dim:(h + 1) * head_dim] for h in range(heads)], axis=0)

    q_st = stack_heads(q)
    k_st = stack_heads(k)
    v_st = stack_heads(v)

    # All (batch, head) score blocks in a single matmul; last-dim contraction
    # (no explicit transpose).  mask is 0 on same-(batch, head) blocks, -1e30 off
    # them, so one row softmax == per-(batch, head) softmax.
    s_mat = jnp.einsum("qd,kd->qk", q_st, k_st,
                       preferred_element_type=jnp.float32)       # (H*rows, H*rows)
    s_mat = s_mat + mask_ref[...]

    s_mat = s_mat - jnp.max(s_mat, axis=-1, keepdims=True)
    p = jnp.exp(s_mat)
    p = p * pl.reciprocal(jnp.sum(p, axis=-1, keepdims=True), approx=True)

    ctx_st = jnp.dot(p, v_st, preferred_element_type=jnp.float32)  # (H*rows, Dh)

    # Un-stack heads back to (rows, d)   (== permute+reshape in the torch code).
    ctx = jnp.concatenate(
        [ctx_st[h * rows:(h + 1) * rows, :] for h in range(heads)], axis=1)

    # BaseBertSelfOutput: dense -> (dropout=id) -> residual add -> LayerNorm.
    y = jnp.dot(ctx, wo_ref[...], preferred_element_type=jnp.float32) + bo + x
    mean = jnp.mean(y, axis=-1, keepdims=True)
    yc = y - mean
    var = jnp.mean(yc * yc, axis=-1, keepdims=True)
    o_ref[...] = yc * jax.lax.rsqrt(var + LN_EPS) * gamma + beta


def _tensorcores_per_chip():
    """Best-effort: 2 TensorCores on v7x, 1 on v5e/v6e.  Safe fallback = 1."""
    try:
        kind = jax.devices()[0].device_kind.lower()
    except Exception:
        return 1
    return 2 if ("v7" in kind or "7x" in kind) else 1


def bert_self_attention(hidden_states, params, *, batches_per_block=None):
    """hidden_states: (B, S, D) float32.  params: dict of torch-layout weights."""
    B, S, D = hidden_states.shape
    H = NUM_HEADS
    Dh = D // H

    # --- weight prep (glue): fuse Q|K|V, transpose torch (out, in) -> (in, out) ---
    wqkv = jnp.concatenate(
        [params["wq"].T, params["wk"].T, params["wv"].T], axis=1)       # (D, 3D)
    bqkv = jnp.concatenate(
        [params["bq"], params["bk"], params["bv"]]).reshape(1, 3 * D)   # (1, 3D)
    wo = params["wo"].T                                                 # (D, D)
    bo = params["bo"].reshape(1, D)
    gamma = params["ln_gamma"].reshape(1, D)
    beta = params["ln_beta"].reshape(1, D)

    # Grid: single step (all batches fused) on 1-TC chips; batch-parallel on v7x.
    if batches_per_block is None:
        n_tc = _tensorcores_per_chip()
        batches_per_block = B // n_tc if (n_tc > 1 and B % n_tc == 0) else B
    bb = batches_per_block
    grid = (B // bb,)
    rows = bb * S
    hs_tot = H * rows

    # Additive block-diagonal mask over the stacked (head, batch, seq) axis.
    blk = jnp.arange(hs_tot, dtype=jnp.int32) // S
    attn_mask = jnp.where(blk[:, None] == blk[None, :], 0.0, _NEG_INF
                          ).astype(jnp.float32)                         # (hs_tot, hs_tot)

    x2 = hidden_states.reshape(B * S, D)     # lane-friendlier 2-D activation slab

    kernel = functools.partial(_bert_attn_kernel, heads=H, head_dim=Dh)
    const = lambda g: (0, 0)

    out2 = pl.pallas_call(
        kernel,
        out_shape=jax.ShapeDtypeStruct((B * S, D), jnp.float32),
        grid=grid,
        in_specs=[
            pl.BlockSpec((rows, D), lambda g: (g, 0)),      # activations
            pl.BlockSpec((hs_tot, hs_tot), const),          # block-diag mask
            pl.BlockSpec((D, 3 * D), const),                # fused Wqkv
            pl.BlockSpec((1, 3 * D), const),                # fused bqkv
            pl.BlockSpec((D, D), const),                    # Wo
            pl.BlockSpec((1, D), const),                    # bo
            pl.BlockSpec((1, D), const),                    # LN gamma
            pl.BlockSpec((1, D), const),                    # LN beta
        ],
        out_specs=pl.BlockSpec((rows, D), lambda g: (g, 0)),
        compiler_params=pltpu.CompilerParams(
            dimension_semantics=("parallel",)),
    )(x2, attn_mask, wqkv, bqkv, wo, bo, gamma, beta)

    return out2.reshape(B, S, D)


def _reference(hidden_states, params):
    """Pure-JAX reference mirroring the PyTorch forward (eval mode)."""
    B, S, D = hidden_states.shape
    x = hidden_states
    q = x @ params["wq"].T + params["bq"]
    k = x @ params["wk"].T + params["bk"]
    v = x @ params["wv"].T + params["bv"]

    def split_heads(t):  # (B, S, D) -> (B, H, S, Dh)
        return t.reshape(B, S, NUM_HEADS, HEAD_DIM).transpose(0, 2, 1, 3)

    qh, kh, vh = split_heads(q), split_heads(k), split_heads(v)
    scores = jnp.einsum("bhqd,bhkd->bhqk", qh, kh) / math.sqrt(HEAD_DIM)
    probs = jax.nn.softmax(scores, axis=-1)
    ctx = jnp.einsum("bhqk,bhkd->bhqd", probs, vh)
    ctx = ctx.transpose(0, 2, 1, 3).reshape(B, S, D)

    y = ctx @ params["wo"].T + params["bo"]
    y = y + x
    mean = jnp.mean(y, axis=-1, keepdims=True)
    var = jnp.mean((y - mean) ** 2, axis=-1, keepdims=True)
    yn = (y - mean) / jnp.sqrt(var + LN_EPS)
    return yn * params["ln_gamma"] + params["ln_beta"]


def _init_params(key):
    ks = jax.random.split(key, 8)
    D = HIDDEN
    scale = 0.02
    return {
        "wq": scale * jax.random.normal(ks[0], (D, D), jnp.float32),
        "bq": scale * jax.random.normal(ks[1], (D,), jnp.float32),
        "wk": scale * jax.random.normal(ks[2], (D, D), jnp.float32),
        "bk": scale * jax.random.normal(ks[3], (D,), jnp.float32),
        "wv": scale * jax.random.normal(ks[4], (D, D), jnp.float32),
        "bv": scale * jax.random.normal(ks[5], (D,), jnp.float32),
        "wo": scale * jax.random.normal(ks[6], (D, D), jnp.float32),
        "bo": scale * jax.random.normal(ks[7], (D,), jnp.float32),
        "ln_gamma": jnp.ones((D,), jnp.float32),
        "ln_beta": jnp.zeros((D,), jnp.float32),
    }


if __name__ == "__main__":
    key = jax.random.PRNGKey(0)
    k_x, k_p = jax.random.split(key)
    hidden_states = jax.random.normal(k_x, (BATCH, SEQ, HIDDEN), jnp.float32)
    params = _init_params(k_p)

    out = jax.block_until_ready(bert_self_attention(hidden_states, params))
    ref = _reference(hidden_states, params)

    assert out.shape == (BATCH, SEQ, HIDDEN)
    err = jnp.max(jnp.abs(out - ref))
    # Tolerance slightly loosened vs. pure fp32 because the softmax denominator uses
    # the EUP approx reciprocal; residual + LayerNorm keep the final error ~1e-5.
    assert jnp.allclose(out, ref, atol=1e-3, rtol=1e-3), f"max abs err {err}"
    print("KERNEL_OK")
</pallas_src>

<mosaic_0001>
module attributes {stable_mosaic.version = 11 : i64} {
  func.func @_bert_attn_kernel(%arg0: i32, %arg1: memref<16x32xf32, #tpu.memory_space<vmem>>, %arg2: memref<64x64xf32, #tpu.memory_space<vmem>>, %arg3: memref<32x96xf32, #tpu.memory_space<vmem>>, %arg4: memref<1x96xf32, #tpu.memory_space<vmem>>, %arg5: memref<32x32xf32, #tpu.memory_space<vmem>>, %arg6: memref<1x32xf32, #tpu.memory_space<vmem>>, %arg7: memref<1x32xf32, #tpu.memory_space<vmem>>, %arg8: memref<1x32xf32, #tpu.memory_space<vmem>>, %arg9: memref<16x32xf32, #tpu.memory_space<vmem>>) attributes {dimension_semantics = [#tpu.dimension_semantics<parallel>], iteration_bounds = array<i64: 1>, scalar_prefetch = 0 : i64, scratch_operands = 0 : i64, tpu.core_type = #tpu.core_type<tc>, window_params = [{transform_indices = @transform_0, window_bounds = array<i64: 16, 32>}, {pipeline_mode = #tpu.pipeline_mode<synchronous>, transform_indices = @transform_1, window_bounds = array<i64: 64, 64>}, {pipeline_mode = #tpu.pipeline_mode<synchronous>, transform_indices = @transform_2, window_bounds = array<i64: 32, 96>}, {pipeline_mode = #tpu.pipeline_mode<synchronous>, transform_indices = @transform_3, window_bounds = array<i64: 1, 96>}, {pipeline_mode = #tpu.pipeline_mode<synchronous>, transform_indices = @transform_4, window_bounds = array<i64: 32, 32>}, {pipeline_mode = #tpu.pipeline_mode<synchronous>, transform_indices = @transform_5, window_bounds = array<i64: 1, 32>}, {pipeline_mode = #tpu.pipeline_mode<synchronous>, transform_indices = @transform_6, window_bounds = array<i64: 1, 32>}, {pipeline_mode = #tpu.pipeline_mode<synchronous>, transform_indices = @transform_7, window_bounds = array<i64: 1, 32>}, {transform_indices = @transform_8, window_bounds = array<i64: 16, 32>}]} {
    %c0 = arith.constant 0 : index
    %c0_0 = arith.constant 0 : index
    %0 = vector.load %arg1[%c0, %c0_0] : memref<16x32xf32, #tpu.memory_space<vmem>>, vector<16x32xf32>
    %c0_1 = arith.constant 0 : index
    %c0_2 = arith.constant 0 : index
    %1 = vector.load %arg4[%c0_1, %c0_2] : memref<1x96xf32, #tpu.memory_space<vmem>>, vector<1x96xf32>
    %c0_3 = arith.constant 0 : index
    %c0_4 = arith.constant 0 : index
    %2 = vector.load %arg6[%c0_3, %c0_4] : memref<1x32xf32, #tpu.memory_space<vmem>>, vector<1x32xf32>
    %c0_5 = arith.constant 0 : index
    %c0_6 = arith.constant 0 : index
    %3 = vector.load %arg7[%c0_5, %c0_6] : memref<1x32xf32, #tpu.memory_space<vmem>>, vector<1x32xf32>
    %c0_7 = arith.constant 0 : index
    %c0_8 = arith.constant 0 : index
    %4 = vector.load %arg8[%c0_7, %c0_8] : memref<1x32xf32, #tpu.memory_space<vmem>>, vector<1x32xf32>
    %c0_9 = arith.constant 0 : index
    %c0_10 = arith.constant 0 : index
    %5 = vector.load %arg3[%c0_9, %c0_10] : memref<32x96xf32, #tpu.memory_space<vmem>>, vector<32x96xf32>
    %cst = arith.constant dense<0.000000e+00> : vector<16x96xf32>
    %6 = tpu.matmul %0, %5, %cst {dimension_numbers = #tpu.dot_dimension_numbers<[1], [0], [0], [1], [0, 0, 1, 1], [], []>} : vector<16x32xf32>, vector<32x96xf32>, vector<16x96xf32> -> vector<16x96xf32>
    %7 = vector.broadcast %1 : vector<1x96xf32> to vector<16x96xf32>
    %8 = arith.addf %6, %7 : vector<16x96xf32>
    %9 = vector.extract_strided_slice %8 {offsets = [0, 0], sizes = [16, 32], strides = [1, 1]} : vector<16x96xf32> to vector<16x32xf32>
    %cst_11 = arith.constant 0.353553385 : f32
    %10 = vector.broadcast %cst_11 : f32 to vector<16x32xf32>
    %11 = arith.mulf %9, %10 : vector<16x32xf32>
    %12 = vector.extract_strided_slice %8 {offsets = [0, 32], sizes = [16, 32], strides = [1, 1]} : vector<16x96xf32> to vector<16x32xf32>
    %13 = vector.extract_strided_slice %8 {offsets = [0, 64], sizes = [16, 32], strides = [1, 1]} : vector<16x96xf32> to vector<16x32xf32>
    %14 = vector.extract_strided_slice %11 {offsets = [0, 0], sizes = [16, 8], strides = [1, 1]} : vector<16x32xf32> to vector<16x8xf32>
    %15 = vector.extract_strided_slice %11 {offsets = [0, 8], sizes = [16, 8], strides = [1, 1]} : vector<16x32xf32> to vector<16x8xf32>
    %16 = vector.extract_strided_slice %11 {offsets = [0, 16], sizes = [16, 8], strides = [1, 1]} : vector<16x32xf32> to vector<16x8xf32>
    %17 = vector.extract_strided_slice %11 {offsets = [0, 24], sizes = [16, 8], strides = [1, 1]} : vector<16x32xf32> to vector<16x8xf32>
    %18 = tpu.concatenate %14, %15, %16, %17 in 0 : vector<16x8xf32>, vector<16x8xf32>, vector<16x8xf32>, vector<16x8xf32> -> vector<64x8xf32>
    %19 = vector.extract_strided_slice %12 {offsets = [0, 0], sizes = [16, 8], strides = [1, 1]} : vector<16x32xf32> to vector<16x8xf32>
    %20 = vector.extract_strided_slice %12 {offsets = [0, 8], sizes = [16, 8], strides = [1, 1]} : vector<16x32xf32> to vector<16x8xf32>
    %21 = vector.extract_strided_slice %12 {offsets = [0, 16], sizes = [16, 8], strides = [1, 1]} : vector<16x32xf32> to vector<16x8xf32>
    %22 = vector.extract_strided_slice %12 {offsets = [0, 24], sizes = [16, 8], strides = [1, 1]} : vector<16x32xf32> to vector<16x8xf32>
    %23 = tpu.concatenate %19, %20, %21, %22 in 0 : vector<16x8xf32>, vector<16x8xf32>, vector<16x8xf32>, vector<16x8xf32> -> vector<64x8xf32>
    %24 = vector.extract_strided_slice %13 {offsets = [0, 0], sizes = [16, 8], strides = [1, 1]} : vector<16x32xf32> to vector<16x8xf32>
    %25 = vector.extract_strided_slice %13 {offsets = [0, 8], sizes = [16, 8], strides = [1, 1]} : vector<16x32xf32> to vector<16x8xf32>
    %26 = vector.extract_strided_slice %13 {offsets = [0, 16], sizes = [16, 8], strides = [1, 1]} : vector<16x32xf32> to vector<16x8xf32>
    %27 = vector.extract_strided_slice %13 {offsets = [0, 24], sizes = [16, 8], strides = [1, 1]} : vector<16x32xf32> to vector<16x8xf32>
    %28 = tpu.concatenate %24, %25, %26, %27 in 0 : vector<16x8xf32>, vector<16x8xf32>, vector<16x8xf32>, vector<16x8xf32> -> vector<64x8xf32>
    "tpu.trace_start"() <{level = 10 : i32, message = "qd,kd->qk"}> : () -> ()
    %cst_12 = arith.constant dense<0.000000e+00> : vector<64x64xf32>
    %29 = tpu.matmul %18, %23, %cst_12 {dimension_numbers = #tpu.dot_dimension_numbers<[1], [1], [0], [0], [0, 0, 1, 0], [], []>} : vector<64x8xf32>, vector<64x8xf32>, vector<64x64xf32> -> vector<64x64xf32>
    "tpu.trace_stop"() : () -> ()
    %c0_13 = arith.constant 0 : index
    %c0_14 = arith.constant 0 : index
    %30 = vector.load %arg2[%c0_13, %c0_14] : memref<64x64xf32, #tpu.memory_space<vmem>>, vector<64x64xf32>
    %31 = arith.addf %29, %30 : vector<64x64xf32>
    %cst_15 = arith.constant dense<0xFF800000> : vector<64xf32>
    %32 = vector.multi_reduction <maximumf>, %31, %cst_15 [1] : vector<64x64xf32> to vector<64xf32>
    %33 = vector.shape_cast %32 : vector<64xf32> to vector<64x1xf32>
    %34 = vector.broadcast %33 : vector<64x1xf32> to vector<64x64xf32>
    %35 = arith.subf %31, %34 : vector<64x64xf32>
    %36 = math.exp %35 : vector<64x64xf32>
    %cst_16 = arith.constant dense<0.000000e+00> : vector<64xf32>
    %37 = vector.multi_reduction <add>, %36, %cst_16 [1] : vector<64x64xf32> to vector<64xf32>
    %38 = vector.shape_cast %37 : vector<64xf32> to vector<64x1xf32>
    %39 = tpu.reciprocal %38 {approx = true} : vector<64x1xf32> -> vector<64x1xf32>
    %40 = vector.broadcast %39 : vector<64x1xf32> to vector<64x64xf32>
    %41 = arith.mulf %36, %40 : vector<64x64xf32>
    %cst_17 = arith.constant dense<0.000000e+00> : vector<64x8xf32>
    %42 = tpu.matmul %41, %28, %cst_17 {dimension_numbers = #tpu.dot_dimension_numbers<[1], [0], [0], [1], [0, 0, 1, 1], [], []>} : vector<64x64xf32>, vector<64x8xf32>, vector<64x8xf32> -> vector<64x8xf32>
    %43 = vector.extract_strided_slice %42 {offsets = [0, 0], sizes = [16, 8], strides = [1, 1]} : vector<64x8xf32> to vector<16x8xf32>
    %44 = vector.extract_strided_slice %42 {offsets = [16, 0], sizes = [16, 8], strides = [1, 1]} : vector<64x8xf32> to vector<16x8xf32>
    %45 = vector.extract_strided_slice %42 {offsets = [32, 0], sizes = [16, 8], strides = [1, 1]} : vector<64x8xf32> to vector<16x8xf32>
    %46 = vector.extract_strided_slice %42 {offsets = [48, 0], sizes = [16, 8], strides = [1, 1]} : vector<64x8xf32> to vector<16x8xf32>
    %47 = tpu.concatenate %43, %44, %45, %46 in 1 : vector<16x8xf32>, vector<16x8xf32>, vector<16x8xf32>, vector<16x8xf32> -> vector<16x32xf32>
    %c0_18 = arith.constant 0 : index
    %c0_19 = arith.constant 0 : index
    %48 = vector.load %arg5[%c0_18, %c0_19] : memref<32x32xf32, #tpu.memory_space<vmem>>, vector<32x32xf32>
    %cst_20 = arith.constant dense<0.000000e+00> : vector<16x32xf32>
    %49 = tpu.matmul %47, %48, %cst_20 {dimension_numbers = #tpu.dot_dimension_numbers<[1], [0], [0], [1], [0, 0, 1, 1], [], []>} : vector<16x32xf32>, vector<32x32xf32>, vector<16x32xf32> -> vector<16x32xf32>
    %50 = vector.broadcast %2 : vector<1x32xf32> to vector<16x32xf32>
    %51 = arith.addf %49, %50 : vector<16x32xf32>
    %52 = arith.addf %51, %0 : vector<16x32xf32>
    %cst_21 = arith.constant dense<0.000000e+00> : vector<16xf32>
    %53 = vector.multi_reduction <add>, %52, %cst_21 [1] : vector<16x32xf32> to vector<16xf32>
    %54 = vector.shape_cast %53 : vector<16xf32> to vector<16x1xf32>
    %cst_22 = arith.constant 3.200000e+01 : f32
    %55 = vector.broadcast %cst_22 : f32 to vector<16x1xf32>
    %56 = arith.divf %54, %55 : vector<16x1xf32>
    %57 = vector.broadcast %56 : vector<16x1xf32> to vector<16x32xf32>
    %58 = arith.subf %52, %57 : vector<16x32xf32>
    %59 = arith.mulf %58, %58 : vector<16x32xf32>
    %cst_23 = arith.constant dense<0.000000e+00> : vector<16xf32>
    %60 = vector.multi_reduction <add>, %59, %cst_23 [1] : vector<16x32xf32> to vector<16xf32>
    %61 = vector.shape_cast %60 : vector<16xf32> to vector<16x1xf32>
    %cst_24 = arith.constant 3.200000e+01 : f32
    %62 = vector.broadcast %cst_24 : f32 to vector<16x1xf32>
    %63 = arith.divf %61, %62 : vector<16x1xf32>
    %cst_25 = arith.constant 9.99999996E-13 : f32
    %64 = vector.broadcast %cst_25 : f32 to vector<16x1xf32>
    %65 = arith.addf %63, %64 : vector<16x1xf32>
    %66 = math.rsqrt %65 : vector<16x1xf32>
    %67 = vector.broadcast %66 : vector<16x1xf32> to vector<16x32xf32>
    %68 = arith.mulf %58, %67 : vector<16x32xf32>
    %69 = vector.broadcast %3 : vector<1x32xf32> to vector<16x32xf32>
    %70 = arith.mulf %68, %69 : vector<16x32xf32>
    %71 = vector.broadcast %4 : vector<1x32xf32> to vector<16x32xf32>
    %72 = arith.addf %70, %71 : vector<16x32xf32>
    %c0_26 = arith.constant 0 : index
    %c0_27 = arith.constant 0 : index
    %73 = vector.load %arg9[%c0_26, %c0_27] : memref<16x32xf32, #tpu.memory_space<vmem>>, vector<16x32xf32>
    tpu.vector_store %arg9[%c0_26, %c0_27], %72 {strides = array<i32>} : memref<16x32xf32, #tpu.memory_space<vmem>>, vector<16x32xf32>,
    return
  }
  func.func @transform_0(%arg0: i32) -> (i32, i32) {
    %c0_i32 = arith.constant 0 : i32
    %c0_i32_0 = arith.constant 0 : i32
    return %arg0, %c0_i32 : i32, i32
  }
  func.func @transform_1(%arg0: i32) -> (i32, i32) {
    %c0_i32 = arith.constant 0 : i32
    %c0_i32_0 = arith.constant 0 : i32
    %c0_i32_1 = arith.constant 0 : i32
    return %c0_i32, %c0_i32_0 : i32, i32
  }
  func.func @transform_2(%arg0: i32) -> (i32, i32) {
    %c0_i32 = arith.constant 0 : i32
    %c0_i32_0 = arith.constant 0 : i32
    %c0_i32_1 = arith.constant 0 : i32
    return %c0_i32, %c0_i32_0 : i32, i32
  }
  func.func @transform_3(%arg0: i32) -> (i32, i32) {
    %c0_i32 = arith.constant 0 : i32
    %c0_i32_0 = arith.constant 0 : i32
    %c0_i32_1 = arith.constant 0 : i32
    return %c0_i32, %c0_i32_0 : i32, i32
  }
  func.func @transform_4(%arg0: i32) -> (i32, i32) {
    %c0_i32 = arith.constant 0 : i32
    %c0_i32_0 = arith.constant 0 : i32
    %c0_i32_1 = arith.constant 0 : i32
    return %c0_i32, %c0_i32_0 : i32, i32
  }
  func.func @transform_5(%arg0: i32) -> (i32, i32) {
    %c0_i32 = arith.constant 0 : i32
    %c0_i32_0 = arith.constant 0 : i32
    %c0_i32_1 = arith.constant 0 : i32
    return %c0_i32, %c0_i32_0 : i32, i32
  }
  func.func @transform_6(%arg0: i32) -> (i32, i32) {
    %c0_i32 = arith.constant 0 : i32
    %c0_i32_0 = arith.constant 0 : i32
    %c0_i32_1 = arith.constant 0 : i32
    return %c0_i32, %c0_i32_0 : i32, i32
  }
  func.func @transform_7(%arg0: i32) -> (i32, i32) {
    %c0_i32 = arith.constant 0 : i32
    %c0_i32_0 = arith.constant 0 : i32
    %c0_i32_1 = arith.constant 0 : i32
    return %c0_i32, %c0_i32_0 : i32, i32
  }
  func.func @transform_8(%arg0: i32) -> (i32, i32) {
    %c0_i32 = arith.constant 0 : i32
    %c0_i32_0 = arith.constant 0 : i32
    return %arg0, %c0_i32 : i32, i32
  }
}

</mosaic_0001>

<bundles_post_ra>
// kernel: tpu_custom_call.1
= control target key start
LH: loop header
LB: loop body
LE: loop exit
PB: predicated region body
PF: predicated region fallthrough
CT: control target
= control target key end

     0   :  { %13 = vsyncpa [#allocation3], 0  ;;  %s1518_s0 = inlined_call_operand.hbm [shape: f32[16,32], index: 0, kind: input, shape index: {}]   ;;  %s1519_s1 = inlined_call_operand.hbm [shape: f32[64,64], index: 1, kind: input, shape index: {}]   ;;  %s1520_s2 = inlined_call_operand.hbm [shape: f32[32,96], index: 2, kind: input, shape index: {}]   ;;  %s1521_s3 = inlined_call_operand.vmem [shape: f32[1,96], index: 3, kind: input, shape index: {}]   ;;  %s1522_s4 = inlined_call_operand.hbm [shape: f32[32,32], index: 4, kind: input, shape index: {}]   ;;  %s1523_s5 = inlined_call_operand.vmem [shape: f32[1,32], index: 5, kind: input, shape index: {}]   ;;  %s1524_s6 = inlined_call_operand.vmem [shape: f32[1,32], index: 6, kind: input, shape index: {}]   ;;  %s1525_s7 = inlined_call_operand.vmem [shape: f32[1,32], index: 7, kind: input, shape index: {}]   ;;  %s1526_s8 = inlined_call_operand.hbm [shape: f32[16,32], index: 8, kind: output, shape index: {}]  }
   0x1   :  { %14 = vsyncpa [#allocation6], 0 }
   0x2   :  { %15 = vsyncpa [#allocation9], 0 }
   0x3   :  { %16 = vsyncpa [#allocation4], 0  ;;  %s1239_s27 = smov [#allocation5]   ;;  %s1240_s29 = smov [#allocation2]  }
   0x4   :  { %s34_s28 = sshll.u32 %s1239_s27, 4  ;;  %s22_s30 = sshll.u32 %s1240_s29, 4  ;;  %s35_s28 = int_to_ptr.vmem [resolvable:$true] %s34_s28  ;;  %s1298_s30 = int_to_ptr.vmem [resolvable:$true] %s22_s30 }
   0x5   :  { %s1121_s11 = scalar_lea.hbm %s1519_s1, 1024 }
   0x6   :  { %p1122_p0 = scmp.ne.s32.totalorder %s1519_s1, %s1121_s11  ;;  %p1125_p1 = scmp.lt.u32.totalorder %s1121_s11, %s1519_s1 }
   0x8   :  { %p1127_p2 = pnand %p1125_p1, %p1122_p0 }
   0xa   :  { %1130 = shalt.err (!%p1127_p2)
}
   0xb   :  { %s1131_s16 = scalar_lea.vmem %s35_s28, 1024  ;;  %p1136_p4 = scmp.lt.s32.totalorder %s35_s28, %s35_s28 }
   0xc   :  { %p1132_p3 = scmp.ne.s32.totalorder %s35_s28, %s1131_s16  ;;  %p1137_p5 = scmp.lt.s32.totalorder %s1131_s16, %s1131_s16 }
   0xe   :  { %p1138_p6 = por %p1137_p5, %p1136_p4 }
  0x10   :  { %p1139_p7 = pnand %p1138_p6, %p1132_p3 }
  0x12   :  { %1142 = shalt.err (!%p1139_p7)
}
  0x13   :  { %s1241_s17 = smov 128   ;;  %s1242_s18 = smov 8  }
  0x14   :  { %40 = dma.hbm_to_vmem [thread:$0]  %s1519_s1, 1024, %s35_s28, [#allocation6], %s1241_s17, %s1241_s17, %s1242_s18  }
  0x15   :  { %s1143_s23 = scalar_lea.hbm %s1518_s0, 256 }
  0x16   :  { %p1144_p8 = scmp.ne.s32.totalorder %s1518_s0, %s1143_s23  ;;  %p1147_p9 = scmp.lt.u32.totalorder %s1143_s23, %s1518_s0 }
  0x18   :  { %p1149_p10 = pnand %p1147_p9, %p1144_p8 }
  0x1a   :  { %1152 = shalt.err (!%p1149_p10)
}
  0x1b   :  { %s1153_s29 = scalar_lea.vmem %s1298_s30, 256  ;;  %p1158_p12 = scmp.lt.s32.totalorder %s1298_s30, %s1298_s30 }
  0x1c   :  { %p1154_p11 = scmp.ne.s32.totalorder %s1298_s30, %s1153_s29  ;;  %p1159_p13 = scmp.lt.s32.totalorder %s1153_s29, %s1153_s29 }
  0x1e   :  { %p1160_p0 = por %p1159_p13, %p1158_p12 }
  0x20   :  { %p1161_p1 = pnand %p1160_p0, %p1154_p11 }
  0x22   :  { %1164 = shalt.err (!%p1161_p1)
}
  0x23   :  { %28 = dma.hbm_to_vmem [thread:$0]  %s1518_s0, 256, %s1298_s30, [#allocation3], %s1241_s17, %s1241_s17, %s1242_s18  }
  0x24   :  { %s1243_s9 = smov [#allocation7]   ;;  %s1244_s11 = smov [#allocation8]  }
  0x25   :  { %s46_s10 = sshll.u32 %s1243_s9, 4  ;;  %s60_s12 = sshll.u32 %s1244_s11, 4  ;;  %s47_s10 = int_to_ptr.vmem [resolvable:$true] %s46_s10  ;;  %s1335_s12 = int_to_ptr.vmem [resolvable:$true] %s60_s12 }
  0x26   :  { %s1165_s15 = scalar_lea.hbm %s1520_s2, 512 }
  0x27   :  { %p1166_p2 = scmp.ne.s32.totalorder %s1520_s2, %s1165_s15  ;;  %p1169_p3 = scmp.lt.u32.totalorder %s1165_s15, %s1520_s2 }
  0x29   :  { %p1171_p4 = pnand %p1169_p3, %p1166_p2 }
  0x2b   :  { %1174 = shalt.err (!%p1171_p4)
}
  0x2c   :  { %s1175_s0 = scalar_lea.vmem %s47_s10, 512  ;;  %p1180_p6 = scmp.lt.s32.totalorder %s47_s10, %s47_s10 }
  0x2d   :  { %p1176_p5 = scmp.ne.s32.totalorder %s47_s10, %s1175_s0  ;;  %p1181_p7 = scmp.lt.s32.totalorder %s1175_s0, %s1175_s0 }
  0x2f   :  { %p1182_p8 = por %p1181_p7, %p1180_p6 }
  0x31   :  { %p1183_p9 = pnand %p1182_p8, %p1176_p5 }
  0x33   :  { %1186 = shalt.err (!%p1183_p9)
}
  0x34   :  { %52 = dma.hbm_to_vmem [thread:$0]  %s1520_s2, 512, %s47_s10, [#allocation6], %s1241_s17, %s1241_s17, %s1242_s18  }
  0x35   :  { %s1187_s25 = scalar_lea.hbm %s1522_s4, 512 }
  0x36   :  { %p1188_p10 = scmp.ne.s32.totalorder %s1522_s4, %s1187_s25  ;;  %p1191_p11 = scmp.lt.u32.totalorder %s1187_s25, %s1522_s4 }
  0x38   :  { %p1193_p12 = pnand %p1191_p11, %p1188_p10 }
  0x3a   :  { %1196 = shalt.err (!%p1193_p12)
}
  0x3b   :  { %s1197_s28 = scalar_lea.vmem %s1335_s12, 512  ;;  %p1202_p0 = scmp.lt.s32.totalorder %s1335_s12, %s1335_s12 }
  0x3c   :  { %p1198_p13 = scmp.ne.s32.totalorder %s1335_s12, %s1197_s28  ;;  %p1203_p1 = scmp.lt.s32.totalorder %s1197_s28, %s1197_s28 }
  0x3e   :  { %p1204_p2 = por %p1203_p1, %p1202_p0 }
  0x40   :  { %p1205_p3 = pnand %p1204_p2, %p1198_p13 }
  0x42   :  { %1208 = shalt.err (!%p1205_p3)
}
  0x43   :  { %66 = dma.hbm_to_vmem [thread:$0]  %s1522_s4, 512, %s1335_s12, [#allocation9], %s1241_s17, %s1241_s17, %s1242_s18  }
  0x44   :  { %1231 = dma.done.wait [#allocation3], 256  }
  0x45   :  { %1232 = vsyncadd [#allocation3], 4294967040 }
  0x46   :  { %1233 = dma.done.wait [#allocation6], 1536  }
  0x47   :  { %1234 = vsyncadd [#allocation6], 4294965760 }
  0x48   :  { %1235 = dma.done.wait [#allocation9], 512  }
  0x49   :  { %1236 = vsyncadd [#allocation9], 4294966784  ;;  %vm101_vm0 = vcmask 261120   ;;  %v91_v0 = vld [vmem:[#allocation7] sm:$0xff]  ;;  %v92_v1 = vld [vmem:[#allocation7 + $0x8] sm:$0xff]  ;;  %vm237_vm1 = vcmask 64512  }
  0x4a   :  { %v93_v2 = vld [vmem:[#allocation7 + $0x10] sm:$0xff]  ;;  %v960_v3 = vpack.c.bf16 %v92_v1, %v91_v0  ;;  %v94_v4 = vld [vmem:[#allocation7 + $0x18] sm:$0xff]  ;;  %s1245_s11 = smov 104   ;;  %s1246_s12 = smov 120   ;;  %vm1399_vm2 = vmpackc.low %vm237_vm1, %vm237_vm1  ;;  %vm375_vm3 = vcmask 523264   ;;  %vm643_vm4 = vcmask 130048  }
  0x4b   :  { %v1372_v5 = vld [vmem:[#allocation2] sm:$0xff]  ;;  %v964_v6 = vpack.c.bf16 %v94_v4, %v93_v2  ;;  %v1376_v7 = vld [vmem:[#allocation2 + $0x8] sm:$0xff]  ;;  %s1247_s13 = smov 96   ;;  %v214_v42 = vld [vmem:[#allocation5 + $0x8] sm:$0xff]  ;;  %s1249_s14 = smov 64   ;;  %vm646_vm5 = vcmask 195584  }
  0x4c   :  { %890 = vmatprep.mubr.msk.f32.mxu0 %vm101_vm0, %v1372_v5  ;;  %961 = vmatprep.subr.bf16.mxu0 %v960_v3  ;;  %v806_v8 = vld [vmem:[%s1521_s3] ss:$0 sm:$0xff]  ;;  %s1248_s3 = smov 112   ;;  %v213_v43 = vld [vmem:[#allocation5] sm:$0xff]  ;;  %v216_v48 = vld [vmem:[#allocation5 + $0x18] sm:$0xff]  ;;  %s1250_s15 = smov 16  }
  0x4d   :  { %963 = vmatpush3.bf16.msra.mxu0 %v960_v3  ;;  %v215_v50 = vld [vmem:[#allocation5 + $0x10] sm:$0xff]  ;;  %v218_v56 = vld [vmem:[#allocation5 + $0x28] sm:$0xff]  ;;  %v217_v57 = vld [vmem:[#allocation5 + $0x20] sm:$0xff]  ;;  %s1251_s16 = smov 24   ;;  %s1252_s22 = smov [#allocation10]  }
  0x4e   :  { %965 = vmatprep.subr.bf16.mxu0 %v964_v6  ;;  %v220_v0 = vld [vmem:[#allocation5 + $0x38] sm:$0xff]  ;;  %v219_v1 = vld [vmem:[#allocation5 + $0x30] sm:$0xff]  ;;  %s792_s23 = sshll.u32 %s1252_s22, 4  ;;  %s793_s23 = int_to_ptr.vmem [resolvable:$true] %s792_s23 }
  0x4f   :  { %s1209_s24 = scalar_lea.vmem %s793_s23, 256  ;;  %p1214_p5 = scmp.lt.s32.totalorder %s793_s23, %s793_s23 }
  0x50   :  { %p1210_p4 = scmp.ne.s32.totalorder %s793_s23, %s1209_s24  ;;  %p1215_p6 = scmp.lt.s32.totalorder %s1209_s24, %s1209_s24 }
  0x51   :  { %967 = vmatpush3.bf16.msra.mxu0 %v964_v6 }
  0x52   :  { %p1216_p7 = por %p1215_p6, %p1214_p5 }
  0x54   :  { %891 = vmatmul.mubr.msk.f32.vlgmr.msra.gmra.mrb[0].mxu0 %vm101_vm0, %v1376_v7  ;;  %p1217_p8 = pnand %p1216_p7, %p1210_p4 }
 0x127   :  { %v892_v9 = vpop.f32.mrb[0].mxu0 }
 0x128   :  { %v180_v10 = vadd.f32 %v892_v9, %v806_v8  ;;  %v174_v11 = vpop.f32.mrb[1].mxu0 }
 0x129   :  { %v175_v12 = vadd.f32 %v806_v8, %v174_v11 }
 0x12a   :  { %v184_v23 = vmul.f32 0.35355338, %v180_v10 }
 0x12b   :  { %v1383_v13 = vpack.i.bf16 %v180_v10, %v175_v12  ;;  %v183_v14 = vmul.f32 0.35355338, %v175_v12 }
 0x12d   :  { %1041 = vrot.lane.b32.xlu1 %v1383_v13, %s1245_s11  ;;  %1031 = vrot.lane.b32.xlu0 %v1383_v13, %s1246_s12 }
 0x12e   :  { %909 = vmatprep.mubr.msk.f32.mxu1 %vm237_vm1, %v183_v14 }
 0x131   :  { %1046 = vrot.lane.b32.xlu1 %v1383_v13, %s1247_s13  ;;  %1036 = vrot.lane.b32.xlu0 %v1383_v13, %s1248_s3 }
 0x19f   :  { %v1390_v15 = vpop.permute.xlu1 %1041  ;;  %v1392_v16 = vpop.permute.xlu0 %1031 }
 0x1a0   :  { %1051 = vrot.lane.b32.xlu0 %v1392_v16, %s1247_s13 }
 0x1a3   :  { %v1047_v17 = vpop.permute.xlu1 %1046  ;;  %v1394_v18 = vpop.permute.xlu0 %1036 }
 0x1a4   :  { %v1049_v19 = vunpack.i.h.bf16 %v1047_v17  ;;  %v1048_v20 = vunpack.i.l.bf16 %v1047_v17  ;;  %1056 = vrot.lane.b32.xlu1 %v1394_v18, %s1247_s13  ;;  %1061 = vrot.lane.b32.xlu0 %v1390_v15, %s1247_s13 }
 0x1a6   :  { %v968_v22 = vpack.c.bf16 %v1049_v19, %v1048_v20 }
 0x1a8   :  { %970 = vmatprep.subr.msk.bf16.mxu1 %vm1399_vm2, %v968_v22  ;;  %187 = vrot.lane.b32.xlu1 %v183_v14, %s1246_s12 }
 0x1a9   :  { %973 = vmatpush3.bf16.xpose.msk.msra.mxu1 %vm1399_vm2, %v968_v22  ;;  %189 = vrot.lane.b32.xlu0 %v184_v23, %s1246_s12 }
 0x1ac   :  { %191 = vrot.lane.b32.xlu1 %v183_v14, %s1248_s3 }
 0x1ad   :  { %193 = vrot.lane.b32.xlu0 %v184_v23, %s1248_s3 }
 0x1b0   :  { %195 = vrot.lane.b32.xlu1 %v183_v14, %s1245_s11 }
 0x1b1   :  { %197 = vrot.lane.b32.xlu0 %v184_v23, %s1245_s11 }
 0x212   :  { %v1052_v24 = vpop.permute.xlu0 %1051 }
 0x213   :  { %v1054_v25 = vunpack.i.h.bf16 %v1052_v24  ;;  %v1053_v26 = vunpack.i.l.bf16 %v1052_v24 }
 0x215   :  { %v974_v27 = vpack.c.bf16 %v1054_v25, %v1053_v26 }
 0x216   :  { %v1057_v28 = vpop.permute.xlu1 %1056  ;;  %v1062_v31 = vpop.permute.xlu0 %1061 }
 0x217   :  { %v1059_v29 = vunpack.i.h.bf16 %v1057_v28  ;;  %v1058_v30 = vunpack.i.l.bf16 %v1057_v28  ;;  %976 = vmatprep.subr.msk.bf16.mxu1 %vm1399_vm2, %v974_v27  ;;  %v1064_v33 = vunpack.i.h.bf16 %v1062_v31  ;;  %v1063_v34 = vunpack.i.l.bf16 %v1062_v31 }
 0x218   :  { %979 = vmatpush3.bf16.xpose.msk.msra.mxu1 %vm1399_vm2, %v974_v27 }
 0x219   :  { %v980_v32 = vpack.c.bf16 %v1059_v29, %v1058_v30  ;;  %v986_v35 = vpack.c.bf16 %v1064_v33, %v1063_v34 }
 0x21a   :  { %v188_v36 = vpop.permute.xlu1 %187 }
 0x21b   :  { %982 = vmatprep.subr.msk.bf16.mxu1 %vm1399_vm2, %v980_v32  ;;  %v190_v37 = vpop.permute.xlu0 %189 }
 0x21e   :  { %v192_v38 = vpop.permute.xlu1 %191 }
 0x21f   :  { %v194_v39 = vpop.permute.xlu0 %193 }
 0x220   :  { %985 = vmatpush3.bf16.xpose.msk.msra.mxu1 %vm1399_vm2, %v980_v32 }
 0x221   :  { %988 = vmatprep.subr.msk.bf16.mxu1 %vm1399_vm2, %v986_v35 }
 0x222   :  { %v196_v40 = vpop.permute.xlu1 %195 }
 0x223   :  { %v198_v41 = vpop.permute.xlu0 %197 }
 0x228   :  { %991 = vmatpush3.bf16.xpose.msk.msra.mxu1 %vm1399_vm2, %v986_v35 }
 0x22f   :  { %910 = vmatmul.mubr.msk.f32.vlgmr.msra.gmra.mrb[0].mxu1 %vm237_vm1, %v184_v23 }
 0x230   :  { %912 = vmatprep.mubr.msk.f32.mxu1 %vm237_vm1, %v188_v36 }
 0x233   :  { %913 = vmatmul.mubr.msk.f32.gmra.mrb[2].mxu1 %vm237_vm1, %v190_v37 }
 0x234   :  { %915 = vmatprep.mubr.msk.f32.mxu1 %vm237_vm1, %v192_v38 }
 0x237   :  { %916 = vmatmul.mubr.msk.f32.gmra.mrb[4].mxu1 %vm237_vm1, %v194_v39 }
 0x238   :  { %918 = vmatprep.mubr.msk.f32.mxu1 %vm237_vm1, %v196_v40 }
 0x23b   :  { %919 = vmatmul.mubr.msk.f32.gmra.mrb[6].mxu1 %vm237_vm1, %v198_v41 }
 0x302   :  { %v911_v44 = vpop.f32.mrb[0].mxu1 }
 0x303   :  { %v342_v45 = vadd.f32 %v911_v44, %v214_v42  ;;  %v336_v46 = vpop.f32.mrb[1].mxu1 }
 0x304   :  { %v337_v47 = vadd.f32 %v336_v46, %v213_v43 }
 0x305   :  { %v379_v49 = vsel %vm375_vm3, %v342_v45, -inf }
 0x306   :  { %380 = vmax.xlane.f32.xlu0 %v379_v49  ;;  %v914_v51 = vpop.f32.mrb[2].mxu1  ;;  %v376_v52 = vsel %vm375_vm3, %v337_v47, -inf }
 0x307   :  { %v352_v53 = vadd.f32 %v914_v51, %v216_v48  ;;  %v346_v54 = vpop.f32.mrb[3].mxu1  ;;  %377 = vmax.xlane.f32.xlu1 %v376_v52 }
 0x308   :  { %v347_v55 = vadd.f32 %v346_v54, %v215_v50 }
 0x309   :  { %v385_v58 = vsel %vm375_vm3, %v352_v53, -inf }
 0x30a   :  { %v917_v59 = vpop.f32.mrb[4].mxu1  ;;  %v382_v60 = vsel %vm375_vm3, %v347_v55, -inf }
 0x30b   :  { %v362_v61 = vadd.f32 %v917_v59, %v218_v56  ;;  %v356_v62 = vpop.f32.mrb[5].mxu1  ;;  %383 = vmax.xlane.f32.xlu0 %v382_v60  ;;  %386 = vmax.xlane.f32.xlu1 %v385_v58 }
 0x30c   :  { %v357_v63 = vadd.f32 %v356_v62, %v217_v57 }
 0x30d   :  { %v391_v2 = vsel %vm375_vm3, %v362_v61, -inf }
 0x30e   :  { %v920_v3 = vpop.f32.mrb[6].mxu1  ;;  %v388_v4 = vsel %vm375_vm3, %v357_v63, -inf }
 0x30f   :  { %v372_v6 = vadd.f32 %v920_v3, %v220_v0  ;;  %v366_v8 = vpop.f32.mrb[7].mxu1  ;;  %389 = vmax.xlane.f32.xlu0 %v388_v4  ;;  %392 = vmax.xlane.f32.xlu1 %v391_v2 }
 0x310   :  { %v367_v9 = vadd.f32 %v366_v8, %v219_v1 }
 0x311   :  { %v397_v10 = vsel %vm375_vm3, %v372_v6, -inf }
 0x312   :  { %v394_v11 = vsel %vm375_vm3, %v367_v9, -inf }
 0x313   :  { %395 = vmax.xlane.f32.xlu0 %v394_v11  ;;  %398 = vmax.xlane.f32.xlu1 %v397_v10 }
 0x329   :  { %1066 = vrot.lane.b32.xlu0 %v1383_v13, %s1249_s14 }
 0x393   :  { %v381_v12 = vpop.xlane.xlu0 %380 }
 0x394   :  { %v401_v14 = vsub.f32 %v342_v45, %v381_v12  ;;  %v378_v17 = vpop.xlane.xlu1 %377 }
 0x395   :  { %v400_v19 = vsub.f32 %v337_v47, %v378_v17 }
 0x396   :  { %v410_v20 = vmul.f32 1.442695, %v401_v14 }
 0x397   :  { %v408_v21 = vmul.f32 1.442695, %v400_v19 }
 0x398   :  { %1085 = vpow2.f32 %v410_v20  ;;  %v384_v22 = vpop.xlane.xlu0 %383  ;;  %v387_v23 = vpop.xlane.xlu1 %386 }
 0x399   :  { %1087 = vpow2.f32 %v408_v21  ;;  %v402_v24 = vsub.f32 %v347_v55, %v384_v22  ;;  %v403_v25 = vsub.f32 %v352_v53, %v387_v23 }
 0x39b   :  { %v412_v26 = vmul.f32 1.442695, %v402_v24  ;;  %v414_v27 = vmul.f32 1.442695, %v403_v25 }
 0x39c   :  { %v390_v28 = vpop.xlane.xlu0 %389  ;;  %v393_v29 = vpop.xlane.xlu1 %392 }
 0x39d   :  { %1089 = vpow2.f32 %v412_v26  ;;  %v404_v30 = vsub.f32 %v357_v63, %v390_v28  ;;  %v405_v31 = vsub.f32 %v362_v61, %v393_v29 }
 0x39e   :  { %1091 = vpow2.f32 %v414_v27 }
 0x39f   :  { %v416_v13 = vmul.f32 1.442695, %v404_v30  ;;  %v418_v32 = vmul.f32 1.442695, %v405_v31 }
 0x3a0   :  { %v396_v33 = vpop.xlane.xlu0 %395  ;;  %v399_v34 = vpop.xlane.xlu1 %398 }
 0x3a1   :  { %1093 = vpow2.f32 %v416_v13  ;;  %v406_v35 = vsub.f32 %v367_v9, %v396_v33  ;;  %v407_v36 = vsub.f32 %v372_v6, %v399_v34  ;;  %v649_v33 = vld [vmem:[#allocation8] sm:$0xff]  ;;  %v650_v34 = vld [vmem:[#allocation8 + $0x8] sm:$0xff] }
 0x3a2   :  { %v1438_v37 = vpop.eup %1085  ;;  %1095 = vpow2.f32 %v418_v32 }
 0x3a3   :  { %v1088_v38 = vpop.eup %1087  ;;  %v422_v39 = vmul.f32 1.442695, %v407_v36  ;;  %v427_v40 = vsel %vm375_vm3, %v1438_v37, 0.0  ;;  %v420_v41 = vmul.f32 1.442695, %v406_v35  ;;  %v1008_v35 = vpack.c.bf16 %v650_v34, %v649_v33  ;;  %v651_v36 = vld [vmem:[#allocation8 + $0x10] sm:$0xff] }
 0x3a4   :  { %v1067_v42 = vpop.permute.xlu0 %1066  ;;  %428 = vadd.xlane.f32.xlu1 %v427_v40  ;;  %v424_v43 = vsel %vm375_vm3, %v1088_v38, 0.0 }
 0x3a5   :  { %v1069_v44 = vunpack.i.h.bf16 %v1067_v42  ;;  %v1068_v45 = vunpack.i.l.bf16 %v1067_v42  ;;  %425 = vadd.xlane.f32.xlu0 %v424_v43  ;;  %1097 = vpow2.f32 %v422_v39 }
 0x3a6   :  { %1099 = vpow2.f32 %v420_v41 }
 0x3a7   :  { %v1443_v46 = vpop.eup %1089  ;;  %v992_v47 = vpack.c.bf16 %v1069_v44, %v1068_v45 }
 0x3a8   :  { %v1445_v48 = vpop.eup %1091  ;;  %v430_v49 = vsel %vm375_vm3, %v1443_v46, 0.0 }
 0x3a9   :  { %993 = vmatprep.subr.bf16.mxu0 %v992_v47  ;;  %431 = vadd.xlane.f32.xlu0 %v430_v49  ;;  %v433_v50 = vsel %vm375_vm3, %v1445_v48, 0.0 }
 0x3aa   :  { %434 = vadd.xlane.f32.xlu1 %v433_v50  ;;  %995 = vmatpush3.bf16.msra.mxu0 %v992_v47 }
 0x3ab   :  { %v1094_v51 = vpop.eup %1093 }
 0x3ac   :  { %v1451_v52 = vpop.eup %1095  ;;  %v436_v53 = vsel %vm375_vm3, %v1094_v51, 0.0 }
 0x3ad   :  { %437 = vadd.xlane.f32.xlu0 %v436_v53  ;;  %v439_v54 = vsel %vm375_vm3, %v1451_v52, 0.0 }
 0x3ae   :  { %440 = vadd.xlane.f32.xlu1 %v439_v54 }
 0x3af   :  { %v1456_v55 = vpop.eup %1097 }
 0x3b0   :  { %v445_v56 = vsel %vm375_vm3, %v1456_v55, 0.0  ;;  %v1100_v57 = vpop.eup %1099 }
 0x3b1   :  { %v442_v58 = vsel %vm375_vm3, %v1100_v57, 0.0 }
 0x3b2   :  { %446 = vadd.xlane.f32.xlu1 %v445_v56 }
 0x3b6   :  { %443 = vadd.xlane.f32.xlu1 %v442_v58 }
 0x3c3   :  { %1076 = vrot.lane.b32.xlu0 %v1394_v18, %s1249_s14 }
 0x3c7   :  { %1071 = vrot.lane.b32.xlu1 %v1392_v16, %s1249_s14  ;;  %1081 = vrot.lane.b32.xlu0 %v1390_v15, %s1249_s14 }
 0x431   :  { %v429_v59 = vpop.xlane.xlu1 %428 }
 0x432   :  { %v426_v60 = vpop.xlane.xlu0 %425 }
 0x433   :  { %1101 = vrcp.f32 %v426_v60 }
 0x434   :  { %1103 = vrcp.f32 %v429_v59  ;;  %v833_v59 = vld [vmem:[%s1523_s5] ss:$0 sm:$0xff] }
 0x436   :  { %v432_v61 = vpop.xlane.xlu0 %431 }
 0x437   :  { %v435_v62 = vpop.xlane.xlu1 %434  ;;  %1105 = vrcp.f32 %v432_v61 }
 0x438   :  { %1107 = vrcp.f32 %v435_v62 }
 0x43a   :  { %v438_v1 = vpop.xlane.xlu0 %437 }
 0x43b   :  { %v441_v63 = vpop.xlane.xlu1 %440  ;;  %1109 = vrcp.f32 %v438_v1 }
 0x43c   :  { %1111 = vrcp.f32 %v441_v63 }
 0x43d   :  { %v1102_v0 = vpop.eup %1101 }
 0x43e   :  { %v456_v2 = vmul.f32 %v1102_v0, %v1088_v38  ;;  %v1077_v4 = vpop.permute.xlu0 %1076  ;;  %v1104_v20 = vpop.eup %1103 }
 0x43f   :  { %v447_v3 = vpop.xlane.xlu1 %446  ;;  %v1079_v8 = vunpack.i.h.bf16 %v1077_v4  ;;  %v1078_v16 = vunpack.i.l.bf16 %v1077_v4  ;;  %v457_v22 = vmul.f32 %v1104_v20, %v1438_v37  ;;  %v652_v37 = vld [vmem:[#allocation8 + $0x18] sm:$0xff] }
 0x440   :  { %937 = vmatprep.mubr.msk.f32.mxu0 %vm375_vm3, %v456_v2  ;;  %v1012_v38 = vpack.c.bf16 %v652_v37, %v651_v36 }
 0x441   :  { %v1000_v12 = vpack.c.bf16 %v1079_v8, %v1078_v16  ;;  %v1106_v21 = vpop.eup %1105 }
 0x442   :  { %v1082_v15 = vpop.permute.xlu0 %1081  ;;  %v1108_v23 = vpop.eup %1107  ;;  %v458_v24 = vmul.f32 %v1106_v21, %v1443_v46 }
 0x443   :  { %v444_v18 = vpop.xlane.xlu1 %443  ;;  %v1084_v14 = vunpack.i.h.bf16 %v1082_v15  ;;  %v1083_v17 = vunpack.i.l.bf16 %v1082_v15  ;;  %v459_v26 = vmul.f32 %v1108_v23, %v1445_v48 }
 0x444   :  { %1113 = vrcp.f32 %v444_v18 }
 0x445   :  { %v1004_v19 = vpack.c.bf16 %v1084_v14, %v1083_v17  ;;  %1115 = vrcp.f32 %v447_v3  ;;  %v1110_v25 = vpop.eup %1109 }
 0x446   :  { %v1112_v27 = vpop.eup %1111  ;;  %v460_v28 = vmul.f32 %v1110_v25, %v1094_v51 }
 0x447   :  { %v1072_v6 = vpop.permute.xlu1 %1071  ;;  %v461_v30 = vmul.f32 %v1112_v27, %v1451_v52 }
 0x448   :  { %v1074_v9 = vunpack.i.h.bf16 %v1072_v6  ;;  %v1073_v10 = vunpack.i.l.bf16 %v1072_v6 }
 0x44a   :  { %v996_v11 = vpack.c.bf16 %v1074_v9, %v1073_v10 }
 0x44c   :  { %997 = vmatprep.subr.bf16.mxu0 %v996_v11 }
 0x44d   :  { %999 = vmatpush3.bf16.msra.mxu0 %v996_v11 }
 0x44e   :  { %1001 = vmatprep.subr.bf16.mxu0 %v1000_v12  ;;  %v1114_v29 = vpop.eup %1113 }
 0x44f   :  { %v1116_v31 = vpop.eup %1115  ;;  %v462_v13 = vmul.f32 %v1114_v29, %v1100_v57 }
 0x450   :  { %v463_v32 = vmul.f32 %v1116_v31, %v1456_v55 }
 0x451   :  { %1003 = vmatpush3.bf16.msra.mxu0 %v1000_v12 }
 0x452   :  { %1005 = vmatprep.subr.bf16.mxu0 %v1004_v19 }
 0x455   :  { %1007 = vmatpush3.bf16.msra.mxu0 %v1004_v19 }
 0x456   :  { %1009 = vmatprep.subr.bf16.mxu0 %v1008_v35 }
 0x458   :  { %938 = vmatmul.mubr.msk.f32.vlgmr.msra.gmra.mrb[2].mxu0 %vm375_vm3, %v457_v22  ;;  %v836_v22 = vld [vmem:[%s1524_s6] ss:$0 sm:$0xff] }
 0x459   :  { %940 = vmatprep.mubr.msk.f32.mxu0 %vm375_vm3, %v458_v24  ;;  %1011 = vmatpush3.bf16.msra.mxu0 %v1008_v35 }
 0x45a   :  { %1013 = vmatprep.subr.bf16.mxu0 %v1012_v38 }
 0x45c   :  { %941 = vmatmul.mubr.msk.f32.gmra.mrb[4].mxu0 %vm375_vm3, %v459_v26  ;;  %v837_v26 = vld [vmem:[%s1525_s7] ss:$0 sm:$0xff] }
 0x45d   :  { %943 = vmatprep.mubr.msk.f32.mxu0 %vm375_vm3, %v460_v28  ;;  %1015 = vmatpush3.bf16.msra.mxu0 %v1012_v38 }
 0x460   :  { %944 = vmatmul.mubr.msk.f32.gmra.mrb[6].mxu0 %vm375_vm3, %v461_v30 }
 0x461   :  { %946 = vmatprep.mubr.msk.f32.mxu0 %vm375_vm3, %v462_v13 }
 0x464   :  { %947 = vmatmul.mubr.msk.f32.gmra.mrb[8].mxu0 %vm375_vm3, %v463_v32 }
 0x52b   :  { %v939_v39 = vpop.f32.mrb[2].mxu0 }
 0x52c   :  { %v578_v40 = vpop.f32.mrb[3].mxu0 }
 0x52f   :  { %v942_v41 = vpop.f32.mrb[4].mxu0 }
 0x530   :  { %621 = vrot.lane.b32.xlu0 %v942_v41, %s1242_s18  ;;  %v588_v42 = vpop.f32.mrb[5].mxu0 }
 0x531   :  { %619 = vrot.lane.b32.xlu1 %v588_v42, %s1242_s18 }
 0x533   :  { %v945_v43 = vpop.f32.mrb[6].mxu0 }
 0x534   :  { %629 = vrot.lane.b32.xlu0 %v945_v43, %s1250_s15  ;;  %v598_v44 = vpop.f32.mrb[7].mxu0 }
 0x535   :  { %627 = vrot.lane.b32.xlu1 %v598_v44, %s1250_s15 }
 0x537   :  { %v948_v45 = vpop.f32.mrb[8].mxu0 }
 0x538   :  { %637 = vrot.lane.b32.xlu0 %v948_v45, %s1251_s16  ;;  %v608_v46 = vpop.f32.mrb[9].mxu0 }
 0x539   :  { %635 = vrot.lane.b32.xlu1 %v608_v46, %s1251_s16 }
 0x5a2   :  { %v622_v47 = vpop.permute.xlu0 %621 }
 0x5a3   :  { %v620_v48 = vpop.permute.xlu1 %619  ;;  %v642_v53 = vsel %vm237_vm1, %v939_v39, %v622_v47 }
 0x5a4   :  { %v641_v51 = vsel %vm237_vm1, %v578_v40, %v620_v48 }
 0x5a6   :  { %v630_v49 = vpop.permute.xlu0 %629 }
 0x5a7   :  { %v628_v50 = vpop.permute.xlu1 %627  ;;  %v645_v56 = vsel %vm643_vm4, %v642_v53, %v630_v49 }
 0x5a8   :  { %v644_v54 = vsel %vm643_vm4, %v641_v51, %v628_v50 }
 0x5aa   :  { %v638_v52 = vpop.permute.xlu0 %637 }
 0x5ab   :  { %v636_v55 = vpop.permute.xlu1 %635  ;;  %v648_v58 = vsel %vm646_vm5, %v645_v56, %v638_v52 }
 0x5ac   :  { %v647_v57 = vsel %vm646_vm5, %v644_v54, %v636_v55 }
 0x5ad   :  { %957 = vmatprep.mubr.msk.f32.mxu0 %vm101_vm0, %v647_v57 }
 0x5ae   :  { %958 = vmatmul.mubr.msk.f32.vlgmr.msra.gmra.mrb[10].mxu0 %vm101_vm0, %v648_v58 }
 0x681   :  { %v959_v60 = vpop.f32.mrb[10].mxu0 }
 0x682   :  { %v737_v61 = vadd.f32 %v959_v60, %v833_v59  ;;  %v731_v62 = vpop.f32.mrb[11].mxu0 }
 0x683   :  { %v732_v63 = vadd.f32 %v833_v59, %v731_v62 }
 0x684   :  { %v741_v0 = vadd.f32 %v737_v61, %v1376_v7 }
 0x685   :  { %v740_v1 = vadd.f32 %v732_v63, %v1372_v5 }
 0x686   :  { %v745_v2 = vsel %vm101_vm0, %v741_v0, 0.0 }
 0x687   :  { %746 = vadd.xlane.f32.xlu0 %v745_v2  ;;  %v742_v3 = vsel %vm101_vm0, %v740_v1, 0.0 }
 0x688   :  { %743 = vadd.xlane.f32.xlu1 %v742_v3 }
 0x714   :  { %v747_v4 = vpop.xlane.xlu0 %746 }
 0x715   :  { %v750_v18 = vmul.f32 0.03125, %v747_v4  ;;  %v744_v6 = vpop.xlane.xlu1 %743 }
 0x716   :  { %v749_v8 = vmul.f32 0.03125, %v744_v6 }
 0x717   :  { %v752_v16 = vsub.f32 %v741_v0, %v750_v18 }
 0x718   :  { %v751_v9 = vsub.f32 %v740_v1, %v749_v8 }
 0x719   :  { %v754_v10 = vmul.f32 %v752_v16, %v752_v16 }
 0x71a   :  { %v753_v15 = vmul.f32 %v751_v9, %v751_v9 }
 0x71b   :  { %v758_v11 = vsel %vm101_vm0, %v754_v10, 0.0 }
 0x71c   :  { %759 = vadd.xlane.f32.xlu1 %v758_v11  ;;  %v755_v7 = vsel %vm101_vm0, %v753_v15, 0.0 }
 0x71d   :  { %756 = vadd.xlane.f32.xlu0 %v755_v7 }
 0x7a9   :  { %v760_v5 = vpop.xlane.xlu1 %759 }
 0x7aa   :  { %v762_v12 = vmul.f32 0.03125, %v760_v5  ;;  %v757_v14 = vpop.xlane.xlu0 %756 }
 0x7ab   :  { %v761_v17 = vmul.f32 0.03125, %v757_v14 }
 0x7ac   :  { %v764_v19 = vadd.f32 1e-12, %v762_v12 }
 0x7ad   :  { %v763_v20 = vadd.f32 1e-12, %v761_v17 }
 0x7ae   :  { %1117 = vrsqrt.f32 %v764_v19 }
 0x7af   :  { %1119 = vrsqrt.f32 %v763_v20 }
 0x7b8   :  { %v1118_v21 = vpop.eup %1117 }
 0x7b9   :  { %v1120_v23 = vpop.eup %1119  ;;  %v768_v24 = vmul.f32 %v1118_v21, %v752_v16 }
 0x7ba   :  { %v767_v25 = vmul.f32 %v1120_v23, %v751_v9 }
 0x7bb   :  { %v776_v27 = vmul.f32 %v836_v22, %v768_v24 }
 0x7bc   :  { %v775_v28 = vmul.f32 %v836_v22, %v767_v25 }
 0x7bd   :  { %v784_v29 = vadd.f32 %v837_v26, %v776_v27 }
 0x7be   :  { %v783_v30 = vadd.f32 %v837_v26, %v775_v28 }
 0x7bf   :  { %786 = vst.msk [vmem:[#allocation10 + $0x8] sm:$0xff] %vm101_vm0, %v784_v29 }
 0x7c0   :  { %785 = vst.msk [vmem:[#allocation10] sm:$0xff] %vm101_vm0, %v783_v30 }
 0x7c1   :  { %1220 = shalt.err (!%p1217_p8)
}
 0x7c2   :  { %s1221_s25 = scalar_lea.hbm %s1526_s8, 256 }
 0x7c3   :  { %p1222_p9 = scmp.ne.s32.totalorder %s1526_s8, %s1221_s25  ;;  %p1225_p10 = scmp.lt.u32.totalorder %s1221_s25, %s1526_s8 }
 0x7c5   :  { %p1227_p11 = pnand %p1225_p10, %p1222_p9 }
 0x7c7   :  { %1230 = shalt.err (!%p1227_p11)
}
 0x7c8   :  { %798 = dma.vmem_to_hbm [thread:$0]  %s793_s23, 256, %s1526_s8, [#allocation4], %s1241_s17, %s1241_s17, %s1242_s18  }
 0x7c9   :  { %1237 = dma.done.wait [#allocation4], 256  }
 0x7ca   :  { %1238 = vsyncadd [#allocation4], 4294967040 }
 0x7cb   :  { %802 = vsyncpa [#allocation3], 1 }
 0x7cc   :  { %803 = vsyncpa [#allocation6], 1 }
 0x7cd   :  { %804 = vsyncpa [#allocation9], 1 }
 0x7ce   :  { %805 = vsyncpa [#allocation4], 1 }

</bundles_post_ra>
